<compile_context>
chip_gen: v7x
topology: tpu7x:2x2x1
jax: 0.10.0
libtpu: 0.0.40
codegen_flags: <defaults>
</compile_context>

<pallas_src>
import jax
import jax.numpy as jnp
from jax.experimental import pallas as pl
from jax.experimental.pallas import tpu as pltpu


# ----------------------------------------------------------------------------
# helpers
# ----------------------------------------------------------------------------
def _round_up(x: int, m: int) -> int:
    return ((x + m - 1) // m) * m


def _sublane_multiple(dtype) -> int:
    itemsize = jnp.dtype(dtype).itemsize
    if itemsize >= 4:
        return 8
    if itemsize == 2:
        return 16
    return 32


def _vmem_capacity_bytes() -> int:
    try:
        return int(pltpu.get_tpu_info().vmem_capacity_bytes)
    except Exception:
        return 64 * 2 ** 20  # conservative (v7x-sized) fallback


# ----------------------------------------------------------------------------
# fused kernel: whole weights resident in VMEM, batch streamed over the grid
# ----------------------------------------------------------------------------
def _refiner_fused_kernel(x_ref, we1_ref, we2_ref, wd1_ref, wd2_ref,
                          z_ref, y_ref):
    """x_ref: (tm, D) tile; weights: [in, out] layout, VMEM-resident."""
    w_dt = we1_ref.dtype
    x = x_ref[...]

    # encoder MLP: relu(x @ We1) @ We2, f32 accumulation on the MXU
    h_e = jnp.dot(x.astype(w_dt), we1_ref[...],
                  preferred_element_type=jnp.float32)
    h_e = jnp.maximum(h_e, 0.0)
    z_acc = jnp.dot(h_e.astype(w_dt), we2_ref[...],
                    preferred_element_type=jnp.float32)

    # Materialize z in its output dtype and chain *that* value into the
    # decoder (matches PyTorch: de_mlp consumes the stored z).
    z_out = z_acc.astype(z_ref.dtype)
    z_ref[...] = z_out

    # decoder MLP: relu(z @ Wd1) @ Wd2
    h_d = jnp.dot(z_out.astype(w_dt), wd1_ref[...],
                  preferred_element_type=jnp.float32)
    h_d = jnp.maximum(h_d, 0.0)
    y_acc = jnp.dot(h_d.astype(w_dt), wd2_ref[...],
                    preferred_element_type=jnp.float32)
    y_ref[...] = y_acc.astype(y_ref.dtype)


# ----------------------------------------------------------------------------
# hidden-dim-tiled MLP kernel (scalability fallback for large D / f32 weights)
# grid = (batch tiles, hidden tiles); hidden axis is a reduction ("arbitrary")
# ----------------------------------------------------------------------------
def _mlp_tiled_kernel(x_ref, w1_ref, w2_ref, y_ref, acc_ref):
    h = pl.program_id(1)

    @pl.when(h == 0)
    def _():
        acc_ref[...] = jnp.zeros_like(acc_ref)

    w_dt = w1_ref.dtype
    # ReLU is elementwise over the hidden dim, so per-hidden-tile
    # relu(x @ W1[:, h]) @ W2[h, :] sums exactly to the full MLP output.
    a = jnp.dot(x_ref[...].astype(w_dt), w1_ref[...],
                preferred_element_type=jnp.float32)
    a = jnp.maximum(a, 0.0)
    acc_ref[...] += jnp.dot(a.astype(w_dt), w2_ref[...],
                            preferred_element_type=jnp.float32)

    @pl.when(h == pl.num_programs(1) - 1)
    def _():
        y_ref[...] = acc_ref[...].astype(y_ref.dtype)


def _mlp_tiled(x, w1_t, w2_t, *, tm_eff, th, vmem_limit_bytes):
    B, D = x.shape
    H = w1_t.shape[1]
    assert H % th == 0, "hidden tile must divide 2*dim exactly (reduction axis)"
    n_b = pl.cdiv(B, tm_eff)
    n_h = H // th

    w_itemsize = jnp.dtype(w1_t.dtype).itemsize
    cost = pl.CostEstimate(
        flops=4 * B * D * H,
        transcendentals=0,
        bytes_accessed=(2 * D * H * w_itemsize
                        + 2 * B * D * jnp.dtype(x.dtype).itemsize),
    )

    return pl.pallas_call(
        _mlp_tiled_kernel,
        out_shape=jax.ShapeDtypeStruct((B, D), x.dtype),
        grid_spec=pltpu.PrefetchScalarGridSpec(
            num_scalar_prefetch=0,
            grid=(n_b, n_h),
            in_specs=[
                pl.BlockSpec((tm_eff, D), lambda i, h: (i, 0)),
                pl.BlockSpec((D, th), lambda i, h: (0, h)),
                pl.BlockSpec((th, D), lambda i, h: (h, 0)),
            ],
            out_specs=pl.BlockSpec((tm_eff, D), lambda i, h: (i, 0)),
            scratch_shapes=[pltpu.VMEM((tm_eff, D), jnp.float32)],
        ),
        compiler_params=pltpu.CompilerParams(
            dimension_semantics=("parallel", "arbitrary"),
            vmem_limit_bytes=vmem_limit_bytes,
        ),
        cost_estimate=cost,
    )(x, w1_t, w2_t)


# ----------------------------------------------------------------------------
# public wrapper
# ----------------------------------------------------------------------------
def refiner_forward(x, we1_t, we2_t, wd1_t, wd2_t, *, tm=None, mode="auto",
                    hidden_tile=None, vmem_limit_bytes=None):
    """Refiner forward: returns (z, y), each [B, D] in x.dtype.

    x     : [B, D]
    we1_t : [D, 2D]   en_mlp.fc1.weight pre-transposed to [in, out]
    we2_t : [2D, D]   en_mlp.fc2.weight pre-transposed
    wd1_t : [D, 2D]   de_mlp.fc1.weight pre-transposed
    wd2_t : [2D, D]   de_mlp.fc2.weight pre-transposed

    Recommended production config: bf16 x/weights (f32 accumulation is kept
    inside the kernel).  mode: "auto" | "fused" | "tiled".
    """
    B, D = x.shape
    H = 2 * D
    assert we1_t.shape == (D, H) and we2_t.shape == (H, D)
    assert wd1_t.shape == (D, H) and wd2_t.shape == (H, D)

    # --- per-generation sizing ------------------------------------------------
    vmem_cap = _vmem_capacity_bytes()
    vmem_budget = max(32 * 2 ** 20, vmem_cap - 12 * 2 ** 20)  # ~52 MiB v7x, ~116 MiB v5e/v6e
    if vmem_limit_bytes is None:
        vmem_limit_bytes = vmem_budget
    if tm is None:
        tm = 512 if vmem_cap >= 100 * 2 ** 20 else 256

    # dtype-aware sublane rounding (8 f32, 16 bf16, 32 int8/fp8)
    sub = max(_sublane_multiple(x.dtype), _sublane_multiple(we1_t.dtype))
    tm_eff = max(sub, min(_round_up(int(tm), sub), _round_up(B, sub)))
    # v7x megacore: give the "parallel" batch axis >= 2 grid steps when B allows
    if pl.cdiv(B, tm_eff) == 1 and B > sub:
        tm_eff = max(sub, _round_up((B + 1) // 2, sub))
    n_tiles = pl.cdiv(B, tm_eff)

    # --- fused vs. hidden-dim-tiled decision ----------------------------------
    w_itemsize = jnp.dtype(we1_t.dtype).itemsize
    x_itemsize = jnp.dtype(x.dtype).itemsize
    w_bytes = 4 * D * H * w_itemsize                    # 4 weights, single copy
    act_bytes = 2 * tm_eff * D * x_itemsize             # double-buffered x tile
    out_bytes = 2 * 2 * tm_eff * D * x_itemsize         # double-buffered z, y tiles
    tmp_bytes = 2 * tm_eff * H * 4 + 2 * tm_eff * D * 4  # f32 intermediates
    fused_need = int(1.15 * (w_bytes + act_bytes + out_bytes + tmp_bytes))
    use_fused = (mode == "fused") or (mode == "auto" and fused_need <= vmem_budget)

    if use_fused:
        act_spec = pl.BlockSpec((tm_eff, D), lambda i: (i, 0))
        # Whole weight resident in VMEM: one copy, DMA'd once for the grid.
        w_spec = pl.BlockSpec(memory_space=pltpu.MemorySpace.VMEM)

        cost = pl.CostEstimate(
            flops=16 * B * D * D,
            transcendentals=0,
            # weights may be pulled once per TensorCore on megacore parts
            bytes_accessed=w_bytes * min(2, n_tiles) + 3 * B * D * x_itemsize,
        )

        z, y = pl.pallas_call(
            _refiner_fused_kernel,
            out_shape=(
                jax.ShapeDtypeStruct((B, D), x.dtype),
                jax.ShapeDtypeStruct((B, D), x.dtype),
            ),
            grid_spec=pltpu.PrefetchScalarGridSpec(
                num_scalar_prefetch=0,
                grid=(n_tiles,),
                in_specs=[act_spec, w_spec, w_spec, w_spec, w_spec],
                out_specs=[act_spec, act_spec],
            ),
            compiler_params=pltpu.CompilerParams(
                dimension_semantics=("parallel",),
                vmem_limit_bytes=vmem_limit_bytes,
            ),
            cost_estimate=cost,
        )(x, we1_t, we2_t, wd1_t, wd2_t)
        return z, y

    # --- tiled fallback: two K-tiled MLP calls (z materialized, then decoded) --
    if hidden_tile is None:
        for cand in (512, 256, 128):
            if H % cand == 0:
                hidden_tile = cand
                break
        else:
            hidden_tile = H   # no 128-multiple divides H: fall back to untiled hidden
    th = int(hidden_tile)
    z = _mlp_tiled(x, we1_t, we2_t, tm_eff=tm_eff, th=th,
                   vmem_limit_bytes=vmem_limit_bytes)
    y = _mlp_tiled(z, wd1_t, wd2_t, tm_eff=tm_eff, th=th,
                   vmem_limit_bytes=vmem_limit_bytes)
    return z, y


# ----------------------------------------------------------------------------
# demo / self-test
# ----------------------------------------------------------------------------
def _init_linear_weight(key, out_features, in_features, dtype=jnp.float32):
    # PyTorch nn.Linear-shaped [out, in] weight, uniform(-1/sqrt(fan_in), ..)
    bound = 1.0 / jnp.sqrt(jnp.array(in_features, dtype=jnp.float32))
    return jax.random.uniform(key, (out_features, in_features),
                              minval=-bound, maxval=bound, dtype=dtype)


if __name__ == "__main__":
    dim = 128      # small-scale stand-in for the default dim=1024
    batch = 12     # NOT a multiple of the tile -> exercises ragged-block path

    key = jax.random.PRNGKey(0)
    kx, ke1, ke2, kd1, kd2 = jax.random.split(key, 5)

    x = jax.random.normal(kx, (batch, dim), dtype=jnp.float32)

    # PyTorch layout is [out, in]; transpose ONCE at parameter-setup time.
    we1 = _init_linear_weight(ke1, 2 * dim, dim)
    we2 = _init_linear_weight(ke2, dim, 2 * dim)
    wd1 = _init_linear_weight(kd1, 2 * dim, dim)
    wd2 = _init_linear_weight(kd2, dim, 2 * dim)
    we1_t, we2_t, wd1_t, wd2_t = we1.T, we2.T, wd1.T, wd2.T

    # pure-JAX reference
    h_e = jnp.maximum(x @ we1.T, 0.0)
    z_ref = h_e @ we2.T
    h_d = jnp.maximum(z_ref @ wd1.T, 0.0)
    y_ref = h_d @ wd2.T

    # --- f32, fused path (auto) ---
    z, y = refiner_forward(x, we1_t, we2_t, wd1_t, wd2_t)
    jax.block_until_ready((z, y))
    assert z.shape == (batch, dim) and y.shape == (batch, dim)
    assert jnp.allclose(z, z_ref, atol=1e-4, rtol=1e-4)
    assert jnp.allclose(y, y_ref, atol=1e-4, rtol=1e-4)

    # --- bf16, fused path (recommended production config) ---
    bf = jnp.bfloat16
    zb, yb = refiner_forward(x.astype(bf), we1_t.astype(bf), we2_t.astype(bf),
                             wd1_t.astype(bf), wd2_t.astype(bf))
    jax.block_until_ready((zb, yb))
    assert jnp.allclose(zb.astype(jnp.float32), z_ref, atol=2e-1, rtol=2e-1)
    assert jnp.allclose(yb.astype(jnp.float32), y_ref, atol=2e-1, rtol=2e-1)

    # --- hidden-dim-tiled fallback (auto-selected when weights exceed VMEM;
    #     forced here at small scale to exercise the reduction path) ---
    zt, yt = refiner_forward(x, we1_t, we2_t, wd1_t, wd2_t,
                             mode="tiled", hidden_tile=128)
    jax.block_until_ready((zt, yt))
    assert jnp.allclose(zt, z_ref, atol=1e-4, rtol=1e-4)
    assert jnp.allclose(yt, y_ref, atol=1e-4, rtol=1e-4)

    print("KERNEL_OK")
</pallas_src>

<mosaic_0001>
module attributes {stable_mosaic.version = 11 : i64} {
  func.func @_refiner_fused_kernel(%arg0: i32, %arg1: memref<8x128xf32, #tpu.memory_space<vmem>>, %arg2: memref<128x256xf32, #tpu.memory_space<vmem>>, %arg3: memref<256x128xf32, #tpu.memory_space<vmem>>, %arg4: memref<128x256xf32, #tpu.memory_space<vmem>>, %arg5: memref<256x128xf32, #tpu.memory_space<vmem>>, %arg6: memref<8x128xf32, #tpu.memory_space<vmem>>, %arg7: memref<8x128xf32, #tpu.memory_space<vmem>>) attributes {dimension_semantics = [#tpu.dimension_semantics<parallel>], iteration_bounds = array<i64: 2>, scalar_prefetch = 0 : i64, scratch_operands = 0 : i64, tpu.core_type = #tpu.core_type<tc>, window_params = [{transform_indices = @transform_0, window_bounds = array<i64: 8, 128>}, {pipeline_mode = #tpu.pipeline_mode<synchronous>, transform_indices = @transform_1, window_bounds = array<i64: 128, 256>}, {pipeline_mode = #tpu.pipeline_mode<synchronous>, transform_indices = @transform_2, window_bounds = array<i64: 256, 128>}, {pipeline_mode = #tpu.pipeline_mode<synchronous>, transform_indices = @transform_3, window_bounds = array<i64: 128, 256>}, {pipeline_mode = #tpu.pipeline_mode<synchronous>, transform_indices = @transform_4, window_bounds = array<i64: 256, 128>}, {transform_indices = @transform_5, window_bounds = array<i64: 8, 128>}, {transform_indices = @transform_6, window_bounds = array<i64: 8, 128>}]} {
    %c0 = arith.constant 0 : index
    %c0_0 = arith.constant 0 : index
    %0 = vector.load %arg1[%c0, %c0_0] : memref<8x128xf32, #tpu.memory_space<vmem>>, vector<8x128xf32>
    %c0_1 = arith.constant 0 : index
    %c0_2 = arith.constant 0 : index
    %1 = vector.load %arg2[%c0_1, %c0_2] : memref<128x256xf32, #tpu.memory_space<vmem>>, vector<128x256xf32>
    %cst = arith.constant dense<0.000000e+00> : vector<8x256xf32>
    %2 = tpu.matmul %0, %1, %cst {dimension_numbers = #tpu.dot_dimension_numbers<[1], [0], [0], [1], [0, 0, 1, 1], [], []>} : vector<8x128xf32>, vector<128x256xf32>, vector<8x256xf32> -> vector<8x256xf32>
    %cst_3 = arith.constant 0.000000e+00 : f32
    %3 = vector.broadcast %cst_3 : f32 to vector<8x256xf32>
    %4 = arith.maximumf %2, %3 : vector<8x256xf32>
    %c0_4 = arith.constant 0 : index
    %c0_5 = arith.constant 0 : index
    %5 = vector.load %arg3[%c0_4, %c0_5] : memref<256x128xf32, #tpu.memory_space<vmem>>, vector<256x128xf32>
    %cst_6 = arith.constant dense<0.000000e+00> : vector<8x128xf32>
    %6 = tpu.matmul %4, %5, %cst_6 {dimension_numbers = #tpu.dot_dimension_numbers<[1], [0], [0], [1], [0, 0, 1, 1], [], []>} : vector<8x256xf32>, vector<256x128xf32>, vector<8x128xf32> -> vector<8x128xf32>
    %c0_7 = arith.constant 0 : index
    %c0_8 = arith.constant 0 : index
    %7 = vector.load %arg6[%c0_7, %c0_8] : memref<8x128xf32, #tpu.memory_space<vmem>>, vector<8x128xf32>
    tpu.vector_store %arg6[%c0_7, %c0_8], %6 {strides = array<i32>} : memref<8x128xf32, #tpu.memory_space<vmem>>, vector<8x128xf32>,
    %c0_9 = arith.constant 0 : index
    %c0_10 = arith.constant 0 : index
    %8 = vector.load %arg4[%c0_9, %c0_10] : memref<128x256xf32, #tpu.memory_space<vmem>>, vector<128x256xf32>
    %cst_11 = arith.constant dense<0.000000e+00> : vector<8x256xf32>
    %9 = tpu.matmul %6, %8, %cst_11 {dimension_numbers = #tpu.dot_dimension_numbers<[1], [0], [0], [1], [0, 0, 1, 1], [], []>} : vector<8x128xf32>, vector<128x256xf32>, vector<8x256xf32> -> vector<8x256xf32>
    %cst_12 = arith.constant 0.000000e+00 : f32
    %10 = vector.broadcast %cst_12 : f32 to vector<8x256xf32>
    %11 = arith.maximumf %9, %10 : vector<8x256xf32>
    %c0_13 = arith.constant 0 : index
    %c0_14 = arith.constant 0 : index
    %12 = vector.load %arg5[%c0_13, %c0_14] : memref<256x128xf32, #tpu.memory_space<vmem>>, vector<256x128xf32>
    %cst_15 = arith.constant dense<0.000000e+00> : vector<8x128xf32>
    %13 = tpu.matmul %11, %12, %cst_15 {dimension_numbers = #tpu.dot_dimension_numbers<[1], [0], [0], [1], [0, 0, 1, 1], [], []>} : vector<8x256xf32>, vector<256x128xf32>, vector<8x128xf32> -> vector<8x128xf32>
    %c0_16 = arith.constant 0 : index
    %c0_17 = arith.constant 0 : index
    %14 = vector.load %arg7[%c0_16, %c0_17] : memref<8x128xf32, #tpu.memory_space<vmem>>, vector<8x128xf32>
    tpu.vector_store %arg7[%c0_16, %c0_17], %13 {strides = array<i32>} : memref<8x128xf32, #tpu.memory_space<vmem>>, vector<8x128xf32>,
    return
  }
  func.func @transform_0(%arg0: i32) -> (i32, i32) {
    %c0_i32 = arith.constant 0 : i32
    %c0_i32_0 = arith.constant 0 : i32
    return %arg0, %c0_i32 : i32, i32
  }
  func.func @transform_1(%arg0: i32) -> (i32, i32) {
    %c0_i32 = arith.constant 0 : i32
    %c0_i32_0 = arith.constant 0 : i32
    %c0_i32_1 = arith.constant 0 : i32
    return %c0_i32, %c0_i32_0 : i32, i32
  }
  func.func @transform_2(%arg0: i32) -> (i32, i32) {
    %c0_i32 = arith.constant 0 : i32
    %c0_i32_0 = arith.constant 0 : i32
    %c0_i32_1 = arith.constant 0 : i32
    return %c0_i32, %c0_i32_0 : i32, i32
  }
  func.func @transform_3(%arg0: i32) -> (i32, i32) {
    %c0_i32 = arith.constant 0 : i32
    %c0_i32_0 = arith.constant 0 : i32
    %c0_i32_1 = arith.constant 0 : i32
    return %c0_i32, %c0_i32_0 : i32, i32
  }
  func.func @transform_4(%arg0: i32) -> (i32, i32) {
    %c0_i32 = arith.constant 0 : i32
    %c0_i32_0 = arith.constant 0 : i32
    %c0_i32_1 = arith.constant 0 : i32
    return %c0_i32, %c0_i32_0 : i32, i32
  }
  func.func @transform_5(%arg0: i32) -> (i32, i32) {
    %c0_i32 = arith.constant 0 : i32
    %c0_i32_0 = arith.constant 0 : i32
    return %arg0, %c0_i32 : i32, i32
  }
  func.func @transform_6(%arg0: i32) -> (i32, i32) {
    %c0_i32 = arith.constant 0 : i32
    %c0_i32_0 = arith.constant 0 : i32
    return %arg0, %c0_i32 : i32, i32
  }
}

</mosaic_0001>

<bundles_post_ra>
// kernel: tpu_custom_call.1
= control target key start
LH: loop header
LB: loop body
LE: loop exit
PB: predicated region body
PF: predicated region fallthrough
CT: control target
= control target key end

     0   :  { %12 = vsyncpa [#allocation3], 0  ;;  %s1856_s0 = inlined_call_operand.hbm [shape: f32[12,128], index: 0, kind: input, shape index: {}]   ;;  %s1857_s1 = inlined_call_operand.hbm [shape: f32[128,256], index: 1, kind: input, shape index: {}]   ;;  %s1858_s2 = inlined_call_operand.hbm [shape: f32[256,128], index: 2, kind: input, shape index: {}]   ;;  %s1859_s3 = inlined_call_operand.hbm [shape: f32[128,256], index: 3, kind: input, shape index: {}]   ;;  %s1860_s4 = inlined_call_operand.hbm [shape: f32[256,128], index: 4, kind: input, shape index: {}]   ;;  %s1861_s5 = inlined_call_operand.hbm [shape: f32[12,128], index: 5, kind: output, shape index: {0}]   ;;  %s1862_s6 = inlined_call_operand.hbm [shape: f32[12,128], index: 6, kind: output, shape index: {1}]  }
   0x1   :  { %14 = vsyncpa [#allocation3 + $0x1], 0 }
   0x2   :  { %15 = vsyncpa [#allocation6], 0 }
   0x3   :  { %16 = vsyncpa [#allocation9], 0 }
   0x4   :  { %17 = vsyncpa [#allocation4], 0 }
   0x5   :  { %19 = vsyncpa [#allocation4 + $0x1], 0 }
   0x6   :  { %20 = vsyncpa [#allocation13], 0 }
   0x7   :  { %22 = vsyncpa [#allocation13 + $0x1], 0  ;;  %s1540_s21 = smov 0   ;;  %s1542_s22 = smov 0  }
   0x8   :  { %s1544_s23 = smov 0   ;;  %s1546_s24 = smov 0  }
   0x9 LB: > { %s1493_s25 = smov [#allocation5]   ;;  %s1561_s27 = sadd.s32 4294967295, %s1491_s24   ;;  %s1491_s24 = sphi %s1546_s24, %s1886_s24   ;;  %s1487_s23 = sphi %s1544_s23, %s1885_s23   ;;  %s1483_s22 = sphi %s1542_s22, %s1884_s22   ;;  %s1479_s21 = sphi %s1540_s21, %s1883_s21  }
   0xa   : > { %s207_s26 = sshll.u32 %s1493_s25, 4  ;;  %p926_p0 = scmp.ge.s32.totalorder %s1491_s24, 1  ;;  %s1566_s26 = int_to_ptr.vmem [resolvable:$true] %s207_s26 }
   0xb   : > { %p1863_p1 = scmp.eq.s32.totalorder %s1561_s27, 0  ;;  %p195_p2 = scmp.lt.s32.totalorder %s1491_s24, 3 }
   0xc   : > { %s1494_s29 = smov [#allocation8]   ;;  %s1495_s8 = smov [#allocation7]  }
   0xd   : > { %p1568_p3 = pnand %p926_p0, %p195_p2  ;;  %s233_s30 = sshll.u32 %s1494_s29, 4  ;;  %s1581_s30 = int_to_ptr.vmem [resolvable:$true] %s233_s30 }
   0xe   : > { %s220_s9 = sshll.u32 %s1495_s8, 4  ;;  %s1243_s12 = scalar_lea.hbm %s1857_s1, 4096  ;;  %s1583_s9 = int_to_ptr.vmem [resolvable:$true] %s220_s9 }
   0xf   : > { %s1866_s28 = scalar_select %p1568_p3, 1, 0 }
  0x10   : > { %p1168_p5 = pneg %p1568_p3  ;;  %p1244_p7 = scmp.ne.s32.totalorder %s1857_s1, %s1243_s12 }
  0x11   : > { %p1250_p11 = scmp.lt.u32.totalorder %s1243_s12, %s1857_s1 }
  0x12   : > { %p1577_p6 = pnand %p1168_p5, %p1863_p1 }
  0x14   : > { %p1593_p8 = pneg %p1577_p6 }
  0x16   : > { %p1246_p9 = pnand %p1593_p8, %p1244_p7 }
  0x18   : > { %p1247_p10 = pneg %p1246_p9 }
  0x1a   : > { %p1252_p12 = pnand %p1250_p11, %p1247_p10 }
  0x1c   : > { %1255 = shalt.err (!%p1252_p12)
}
  0x1d   : > { %s1256_s18 = scalar_lea.vmem %s1566_s26, 4096  ;;  %p1264_p5 = scmp.lt.s32.totalorder %s1566_s26, %s1566_s26 }
  0x1e   : > { %p1257_p13 = scmp.ne.s32.totalorder %s1566_s26, %s1256_s18  ;;  %p1265_p4 = scmp.lt.s32.totalorder %s1256_s18, %s1256_s18 }
  0x20   : > { %p1259_p0 = pnand %p1257_p13, %p1593_p8  ;;  %p1266_p7 = por %p1265_p4, %p1264_p5 }
  0x22   : > { %p1260_p2 = pneg %p1259_p0 }
  0x24   : > { %p1267_p9 = pnand %p1266_p7, %p1260_p2 }
  0x26   : > { %1270 = shalt.err (!%p1267_p9)
}
  0x27   : > { %s1496_s19 = smov 256   ;;  %s1497_s20 = smov 16  }
  0x28   : > { %1171 = dma.hbm_to_vmem [thread:$0]  (!%p1577_p6), %s1857_s1, 4096, %s1566_s26, [#allocation6], %s1496_s19, %s1496_s19, %s1497_s20  }
  0x29   : > { %s1271_s11 = scalar_lea.hbm %s1859_s3, 4096 }
  0x2a   : > { %p1272_p4 = scmp.ne.s32.totalorder %s1859_s3, %s1271_s11  ;;  %p1278_p12 = scmp.lt.u32.totalorder %s1271_s11, %s1859_s3 }
  0x2c   : > { %p1274_p10 = pnand %p1272_p4, %p1593_p8 }
  0x2e   : > { %p1275_p11 = pneg %p1274_p10 }
  0x30   : > { %p1280_p13 = pnand %p1278_p12, %p1275_p11 }
  0x32   : > { %1283 = shalt.err (!%p1280_p13)
}
  0x33   : > { %s1284_s26 = scalar_lea.vmem %s1581_s30, 4096  ;;  %p1292_p7 = scmp.lt.s32.totalorder %s1581_s30, %s1581_s30 }
  0x34   : > { %p1285_p0 = scmp.ne.s32.totalorder %s1581_s30, %s1284_s26  ;;  %p1293_p9 = scmp.lt.s32.totalorder %s1284_s26, %s1284_s26 }
  0x36   : > { %p1287_p2 = pnand %p1285_p0, %p1593_p8  ;;  %p1294_p4 = por %p1293_p9, %p1292_p7 }
  0x38   : > { %p1288_p5 = pneg %p1287_p2 }
  0x3a   : > { %p1295_p10 = pnand %p1294_p4, %p1288_p5 }
  0x3c   : > { %1298 = shalt.err (!%p1295_p10)
}
  0x3d   : > { %1177 = dma.hbm_to_vmem [thread:$0]  (!%p1577_p6), %s1859_s3, 4096, %s1581_s30, [#allocation9], %s1496_s19, %s1496_s19, %s1497_s20  }
  0x3e   : > { %s1299_s8 = scalar_lea.hbm %s1858_s2, 4096 }
  0x3f   : > { %p1300_p11 = scmp.ne.s32.totalorder %s1858_s2, %s1299_s8  ;;  %p1306_p0 = scmp.lt.u32.totalorder %s1299_s8, %s1858_s2 }
  0x41   : > { %p1302_p12 = pnand %p1300_p11, %p1593_p8 }
  0x43   : > { %p1303_p13 = pneg %p1302_p12 }
  0x45   : > { %p1308_p2 = pnand %p1306_p0, %p1303_p13 }
  0x47   : > { %1311 = shalt.err (!%p1308_p2)
}
  0x48   : > { %s1312_s30 = scalar_lea.vmem %s1583_s9, 4096  ;;  %p1320_p4 = scmp.lt.s32.totalorder %s1583_s9, %s1583_s9 }
  0x49   : > { %p1313_p5 = scmp.ne.s32.totalorder %s1583_s9, %s1312_s30  ;;  %p1321_p10 = scmp.lt.s32.totalorder %s1312_s30, %s1312_s30 }
  0x4b   : > { %p1315_p7 = pnand %p1313_p5, %p1593_p8  ;;  %p1322_p11 = por %p1321_p10, %p1320_p4 }
  0x4d   : > { %p1316_p9 = pneg %p1315_p7 }
  0x4f   : > { %p1323_p12 = pnand %p1322_p11, %p1316_p9 }
  0x51   : > { %1326 = shalt.err (!%p1323_p12)
}
  0x52   : > { %s1498_s19 = smov 128   ;;  %s1499_s20 = smov 8  }
  0x53   : > { %1174 = dma.hbm_to_vmem [thread:$0]  (!%p1577_p6), %s1858_s2, 4096, %s1583_s9, [#allocation6], %s1498_s19, %s1498_s19, %s1499_s20  }
  0x54   : > { %s1500_s26 = smov [#allocation10]   ;;  %s1327_s29 = scalar_lea.hbm %s1860_s4, 4096 }
  0x55   : > { %s246_s17 = sshll.u32 %s1500_s26, 4  ;;  %p1328_p13 = scmp.ne.s32.totalorder %s1860_s4, %s1327_s29  ;;  %s247_s17 = int_to_ptr.vmem [resolvable:$true] %s246_s17 }
  0x56   : > { %p1334_p5 = scmp.lt.u32.totalorder %s1327_s29, %s1860_s4 }
  0x57   : > { %p1330_p0 = pnand %p1328_p13, %p1593_p8 }
  0x59   : > { %p1331_p2 = pneg %p1330_p0 }
  0x5b   : > { %p1336_p7 = pnand %p1334_p5, %p1331_p2 }
  0x5d   : > { %1339 = shalt.err (!%p1336_p7)
}
  0x5e   : > { %s1340_s9 = scalar_lea.vmem %s247_s17, 4096  ;;  %p1348_p11 = scmp.lt.s32.totalorder %s247_s17, %s247_s17 }
  0x5f   : > { %p1341_p9 = scmp.ne.s32.totalorder %s247_s17, %s1340_s9  ;;  %p1349_p12 = scmp.lt.s32.totalorder %s1340_s9, %s1340_s9 }
  0x61   : > { %p1343_p4 = pnand %p1341_p9, %p1593_p8  ;;  %p1350_p1 = por %p1349_p12, %p1348_p11 }
  0x63   : > { %p1344_p10 = pneg %p1343_p4 }
  0x65   : > { %p1351_p3 = pnand %p1350_p1, %p1344_p10 }
  0x67   : > { %1354 = shalt.err (!%p1351_p3)
}
  0x68   : > { %1180 = dma.hbm_to_vmem [thread:$0]  (!%p1577_p6), %s1860_s4, 4096, %s247_s17, [#allocation9], %s1498_s19, %s1498_s19, %s1499_s20  }
  0x69   : > { %s925_s15 = sadd.s32 4294967294, %s1491_s24   ;;  %s1680_s7 = sadd.s32 1, %s1491_s24  }
  0x6a   : > { %s32_s14 = ssub.s32 %s1491_s24, %s1680_s7  ;;  %s35_s16 = sadd.s32 1, %s1487_s23 }
  0x6b   : > { %p33_p1 = scmp.eq.s32.totalorder %s32_s14, 0  ;;  %p42_p3 = scmp.ne.s32.totalorder %s1487_s23, %s1483_s22 }
  0x6c   : > { %p43_p8 = scmp.eq.s32.totalorder %s1491_s24, 0  ;;  %p48_p13 = scmp.ne.s32.totalorder %s1483_s22, %s1479_s21 }
  0x6d   : > { %s1691_s26 = scalar_select %p33_p1, %s1487_s23, %s35_s16  }
  0x6e   : > { %p1693_p0 = por %p43_p8, %p42_p3  ;;  %p1870_p2 = scmp.eq.s32.totalorder %s1561_s27, 0 }
  0x6f   : > { %p156_p5 = scmp.eq.s32.totalorder %s1561_s27, 1  ;;  %p162_p7 = scmp.eq.s32.totalorder %s925_s15, 1 }
  0x70   : > { %p1699_p6 = por %p1870_p2, %p48_p13  ;;  %p1196_p9 = scmp.lt.s32.totalorder %s1491_s24, 2 }
  0x71   : > { %s260_s20 = sand.u32 1, %s1487_s23   ;;  %p1706_p4 = por %p156_p5, %p42_p3 }
  0x72   : > { %p1710_p10 = por %p162_p7, %p48_p13  ;;  %s932_s29 = sshll.u32 %s260_s20, 3 }
  0x73   : > { %s1872_s17 = scalar_select %p1706_p4, 1, 0 }
  0x74   : > { %s1873_s25 = scalar_select %p1710_p10, 1, 0 }
  0x75   : > { %s933_s8 = sshll.u32 %s1491_s24, 7  ;;  %s264_s9 = scalar_lea.vmem [#allocation2], %s932_s29 }
  0x76   : > { %s1718_s12 = scalar_lea.hbm %s1856_s0, %s933_s8  ;;  %s271_s13 = sshll.u32 %s264_s9, 4  ;;  %s1720_s13 = int_to_ptr.vmem [resolvable:$true] %s271_s13 }
  0x77   : > { %p1724_p11 = pnand %p1196_p9, %p1693_p0  ;;  %s261_s15 = scalar_lea.sflag [#allocation3], %s260_s20 }
  0x78   : > { %s1355_s14 = scalar_lea.hbm %s1718_s12, 128  ;;  %s1360_s8 = scalar_lea.hbm %s1856_s0, 256 }
  0x79   : > { %p1356_p12 = scmp.ne.s32.totalorder %s1718_s12, %s1355_s14  ;;  %p1357_p1 = pneg %p1724_p11 }
  0x7a   : > { %p1361_p13 = scmp.lt.u32.totalorder %s1718_s12, %s1856_s0  ;;  %p1362_p0 = scmp.lt.u32.totalorder %s1360_s8, %s1355_s14 }
  0x7b   : > { %p1358_p3 = pnand %p1357_p1, %p1356_p12  ;;  %p1364_p5 = scmp.lt.u32.totalorder %s1355_s14, %s1718_s12 }
  0x7c   : > { %p1363_p2 = por %p1362_p0, %p1361_p13 }
  0x7d   : > { %p1359_p8 = pneg %p1358_p3 }
  0x7e   : > { %p1365_p7 = por %p1364_p5, %p1363_p2 }
  0x80   : > { %p1366_p9 = pnand %p1365_p7, %p1359_p8 }
  0x82   : > { %1369 = shalt.err (!%p1366_p9)
}
  0x83   : > { %s1370_s20 = scalar_lea.vmem %s1720_s13, 128  ;;  %s1501_s11 = smov [#allocation2]  }
  0x84   : > { %p1371_p12 = scmp.ne.s32.totalorder %s1720_s13, %s1370_s20  ;;  %s1375_s9 = sshll.u32 %s1501_s11, 4  ;;  %s1376_s9 = int_to_ptr.vmem [resolvable:$false] %s1375_s9 }
  0x85   : > { %s1377_s16 = scalar_lea.vmem %s1376_s9, 256  ;;  %p1378_p4 = scmp.lt.s32.totalorder %s1720_s13, %s1376_s9 }
  0x86   : > { %p1373_p3 = pnand %p1371_p12, %p1357_p1  ;;  %p1379_p13 = scmp.lt.s32.totalorder %s1377_s16, %s1370_s20 }
  0x88   : > { %p1374_p10 = pneg %p1373_p3  ;;  %p1380_p0 = por %p1379_p13, %p1378_p4 }
  0x8a   : > { %p1381_p2 = pnand %p1380_p0, %p1374_p10 }
  0x8c   : > { %1384 = shalt.err (!%p1381_p2)
}
  0x8d   : > { %1184 = dma.hbm_to_vmem [thread:$0]  (!%p1724_p11), %s1718_s12, 128, %s1720_s13, %s261_s15  }
  0x8e   : > { %p1875_p8 = scmp.ne.s32.totalorder %s1866_s28, 0 }
  0x8f   : > { %s1756_s14 = sand.u32 (!%p1875_p8), 1, %s1483_s22  }
  0x90   : > { %280 = sbr.rel (%p1875_p8) target bundleno = 1069 (0x42d), region = 40  ;;  %s1759_s29 = sshll.u32 (!%p1875_p8), %s1756_s14, 3 }
  0x91   : > { %s283_s8 = scalar_lea.sflag (!%p1875_p8), [#allocation3], %s1756_s14  ;;  %s286_s18 = scalar_lea.vmem (!%p1875_p8), [#allocation2], %s1759_s29 }
  0x97   : > { %1458 = dma.done.wait (%p1699_p6), %s283_s8, 128  }
  0x98   : > { %1460 = vsyncadd (%p1699_p6), %s283_s8, 4294967168  ;;  %p1876_p4 = scmp.eq.s32.totalorder %s1561_s27, 0 }
  0x9a   : > { %1462 = dma.done.wait (%p1876_p4), [#allocation6], 8192   ;;  %p1877_p10 = pmov %p1876_p4 }
  0x9b   : > { %p1878_p11 = pmov %p1876_p4 }
  0x9c   : > { %1464 = vsyncadd (%p1877_p10), [#allocation6], 4294959104 }
  0x9d   : > { %1466 = dma.done.wait (%p1878_p11), [#allocation9], 8192   ;;  %p1879_p1 = pmov %p1876_p4 }
  0x9e   : > { %v1502_v0 = vmov 0.0   ;;  %v338_v1 = vld [vmem:[#allocation5 + $0x8] sm:$0xff]  ;;  %v340_v2 = vld [vmem:[#allocation5 + $0x18] sm:$0xff]  ;;  %v337_v3 = vld [vmem:[#allocation5] sm:$0xff]  ;;  %s328_s28 = scalar_lea.vmem [#allocation11], %s1759_s29  ;;  %s944_s19 = sshll.u32 %s1561_s27, 7 }
  0x9f   : > { %1468 = vsyncadd (%p1879_p1), [#allocation9], 4294959104  ;;  %433 = vmatprep.mubr.f32.mxu0 %v1502_v0  ;;  %v1018_v4 = vpack.c.bf16 %v340_v2, %v338_v1  ;;  %v339_v5 = vld [vmem:[#allocation5 + $0x10] sm:$0xff]  ;;  %v342_v6 = vld [vmem:[#allocation5 + $0x28] sm:$0xff]  ;;  %s772_s12 = sshll.u32 %s328_s28, 4  ;;  %s1786_s15 = scalar_lea.hbm %s1861_s5, %s944_s19  ;;  %s773_s12 = int_to_ptr.vmem [resolvable:$true] %s772_s12 }
  0xa0   : > { %v344_v7 = vld [vmem:[#allocation5 + $0x38] sm:$0xff]  ;;  %v1020_v8 = vpack.c.bf16 %v339_v5, %v337_v3  ;;  %v341_v10 = vld [vmem:[#allocation5 + $0x20] sm:$0xff]  ;;  %v343_v11 = vld [vmem:[#allocation5 + $0x30] sm:$0xff]  ;;  %s754_s10 = scalar_lea.sflag [#allocation4], %s1756_s14  ;;  %s1385_s20 = scalar_lea.vmem %s773_s12, 128 }
  0xa1   : > { %v1022_v9 = vpack.c.bf16 %v344_v7, %v342_v6  ;;  %v346_v12 = vld [vmem:[#allocation5 + $0x48] sm:$0xff]  ;;  %1019 = vmatprep.subr.bf16.mxu0 %v1018_v4  ;;  %v348_v13 = vld [vmem:[#allocation5 + $0x58] sm:$0xff]  ;;  %v1024_v14 = vpack.c.bf16 %v343_v11, %v341_v10  ;;  %v345_v16 = vld [vmem:[#allocation5 + $0x40] sm:$0xff]  ;;  %p1386_p6 = scmp.ne.s32.totalorder %s773_s12, %s1385_s20  ;;  %p1880_p5 = scmp.ne.s32.totalorder %s1872_s17, 0 }
  0xa2   : > { %1021 = vmatpush1.bf16.msra.mxu0 %v1020_v8  ;;  %v1026_v15 = vpack.c.bf16 %v348_v13, %v346_v12  ;;  %v347_v17 = vld [vmem:[#allocation5 + $0x50] sm:$0xff]  ;;  %v350_v18 = vld [vmem:[#allocation5 + $0x68] sm:$0xff]  ;;  %v352_v19 = vld [vmem:[#allocation5 + $0x78] sm:$0xff]  ;;  %s1503_s11 = smov [#allocation11]  }
  0xa3   : > { %1023 = vmatprep.subr.bf16.mxu0 %v1022_v9  ;;  %v1028_v20 = vpack.c.bf16 %v347_v17, %v345_v16  ;;  %v1030_v21 = vpack.c.bf16 %v352_v19, %v350_v18  ;;  %v349_v22 = vld [vmem:[#allocation5 + $0x60] sm:$0xff]  ;;  %v351_v23 = vld [vmem:[#allocation5 + $0x70] sm:$0xff]  ;;  %v354_v24 = vld [vmem:[#allocation5 + $0x88] sm:$0xff]  ;;  %p1387_p7 = pnand %p1386_p6, %p1880_p5  ;;  %s1389_s9 = sshll.u32 %s1503_s11, 4  ;;  %s1390_s9 = int_to_ptr.vmem [resolvable:$false] %s1389_s9 }
  0xa4   : > { %v356_v25 = vld [vmem:[#allocation5 + $0x98] sm:$0xff]  ;;  %v353_v26 = vld [vmem:[#allocation5 + $0x80] sm:$0xff]  ;;  %v355_v27 = vld [vmem:[#allocation5 + $0x90] sm:$0xff]  ;;  %v1032_v31 = vpack.c.bf16 %v351_v23, %v349_v22  ;;  %s1391_s16 = scalar_lea.vmem %s1390_s9, 256  ;;  %p1392_p12 = scmp.lt.s32.totalorder %s773_s12, %s1390_s9 }
  0xa5   : > { %v458_v28 = vld [vmem:[#allocation7 + $0x80] sm:$0xff]  ;;  %v459_v29 = vld [vmem:[#allocation7 + $0x88] sm:$0xff]  ;;  %v460_v34 = vld [vmem:[#allocation7 + $0x90] sm:$0xff]  ;;  %v1034_v36 = vpack.c.bf16 %v356_v25, %v354_v24  ;;  %v1036_v46 = vpack.c.bf16 %v355_v27, %v353_v26  ;;  %p1388_p9 = pneg %p1387_p7  ;;  %p1393_p3 = scmp.lt.s32.totalorder %s1391_s16, %s1385_s20 }
  0xa6   : > { %1025 = vmatpush1.bf16.msra.mxu0 %v1024_v14  ;;  %v442_v30 = vld [vmem:[#allocation7] sm:$0xff]  ;;  %v1050_v32 = vpack.c.bf16 %v459_v29, %v458_v28  ;;  %v443_v33 = vld [vmem:[#allocation7 + $0x8] sm:$0xff]  ;;  %v461_v35 = vld [vmem:[#allocation7 + $0x98] sm:$0xff] }
  0xa7   : > { %1027 = vmatprep.subr.bf16.mxu0 %v1026_v15  ;;  %v1052_v37 = vpack.c.bf16 %v443_v33, %v442_v30  ;;  %v1054_v38 = vpack.c.bf16 %v461_v35, %v460_v34  ;;  %v444_v39 = vld [vmem:[#allocation7 + $0x10] sm:$0xff]  ;;  %v445_v40 = vld [vmem:[#allocation7 + $0x18] sm:$0xff]  ;;  %v462_v41 = vld [vmem:[#allocation7 + $0xa0] sm:$0xff]  ;;  %p1394_p13 = por %p1393_p3, %p1392_p12 }
  0xa8   : > { %v358_v42 = vld [vmem:[#allocation5 + $0xa8] sm:$0xff]  ;;  %v360_v43 = vld [vmem:[#allocation5 + $0xb8] sm:$0xff]  ;;  %1051 = vmatprep.subr.bf16.mxu1 %v1050_v32  ;;  %v1056_v45 = vpack.c.bf16 %v445_v40, %v444_v39  ;;  %v357_v47 = vld [vmem:[#allocation5 + $0xa0] sm:$0xff] }
  0xa9   : > { %v463_v44 = vld [vmem:[#allocation7 + $0xa8] sm:$0xff]  ;;  %1053 = vmatpush3.bf16.msra.mxu1 %v1052_v37  ;;  %v446_v49 = vld [vmem:[#allocation7 + $0x20] sm:$0xff]  ;;  %v1038_v51 = vpack.c.bf16 %v360_v43, %v358_v42  ;;  %v359_v52 = vld [vmem:[#allocation5 + $0xb0] sm:$0xff]  ;;  %p1395_p0 = pnand %p1394_p13, %p1388_p9 }
  0xaa   : > { %1029 = vmatpush1.bf16.msra.mxu0 %v1028_v20  ;;  %1055 = vmatprep.subr.bf16.mxu1 %v1054_v38  ;;  %v1058_v48 = vpack.c.bf16 %v463_v44, %v462_v41  ;;  %v447_v50 = vld [vmem:[#allocation7 + $0x28] sm:$0xff]  ;;  %v464_v53 = vld [vmem:[#allocation7 + $0xb0] sm:$0xff]  ;;  %v465_v54 = vld [vmem:[#allocation7 + $0xb8] sm:$0xff]  ;;  %v1040_v58 = vpack.c.bf16 %v359_v52, %v357_v47 }
  0xab   : > { %1031 = vmatprep.subr.bf16.mxu0 %v1030_v21  ;;  %v362_v55 = vld [vmem:[#allocation5 + $0xc8] sm:$0xff]  ;;  %v364_v56 = vld [vmem:[#allocation5 + $0xd8] sm:$0xff]  ;;  %v1060_v57 = vpack.c.bf16 %v447_v50, %v446_v49  ;;  %v361_v59 = vld [vmem:[#allocation5 + $0xc0] sm:$0xff]  ;;  %v1062_v60 = vpack.c.bf16 %v465_v54, %v464_v53 }
  0xac   : > { %v448_v61 = vld [vmem:[#allocation7 + $0x30] sm:$0xff]  ;;  %v449_v62 = vld [vmem:[#allocation7 + $0x38] sm:$0xff]  ;;  %v1042_v63 = vpack.c.bf16 %v364_v56, %v362_v55  ;;  %v466_v2 = vld [vmem:[#allocation7 + $0xc0] sm:$0xff] }
  0xad   : > { %1057 = vmatpush3.bf16.msra.mxu1 %v1056_v45  ;;  %v363_v1 = vld [vmem:[#allocation5 + $0xd0] sm:$0xff]  ;;  %v467_v3 = vld [vmem:[#allocation7 + $0xc8] sm:$0xff]  ;;  %v368_v5 = vld [vmem:[#allocation5 + $0xf8] sm:$0xff]  ;;  %v1064_v6 = vpack.c.bf16 %v449_v62, %v448_v61 }
  0xae   : > { %1033 = vmatpush1.bf16.msra.mxu0 %v1032_v31  ;;  %1059 = vmatprep.subr.bf16.mxu1 %v1058_v48  ;;  %v366_v4 = vld [vmem:[#allocation5 + $0xe8] sm:$0xff]  ;;  %v1044_v7 = vpack.c.bf16 %v363_v1, %v361_v59  ;;  %v365_v8 = vld [vmem:[#allocation5 + $0xe0] sm:$0xff]  ;;  %v1066_v9 = vpack.c.bf16 %v467_v3, %v466_v2  ;;  %v367_v13 = vld [vmem:[#allocation5 + $0xf0] sm:$0xff] }
  0xaf   : > { %1035 = vmatprep.subr.bf16.mxu0 %v1034_v36  ;;  %v450_v10 = vld [vmem:[#allocation7 + $0x40] sm:$0xff]  ;;  %v451_v11 = vld [vmem:[#allocation7 + $0x48] sm:$0xff]  ;;  %v1046_v12 = vpack.c.bf16 %v368_v5, %v366_v4  ;;  %v468_v14 = vld [vmem:[#allocation7 + $0xd0] sm:$0xff]  ;;  %v1048_v17 = vpack.c.bf16 %v367_v13, %v365_v8 }
  0xb0   : > { %v469_v15 = vld [vmem:[#allocation7 + $0xd8] sm:$0xff]  ;;  %v1068_v16 = vpack.c.bf16 %v451_v11, %v450_v10  ;;  %v452_v19 = vld [vmem:[#allocation7 + $0x50] sm:$0xff]  ;;  %v470_v21 = vld [vmem:[#allocation7 + $0xe0] sm:$0xff] }
  0xb1   : > { %1061 = vmatpush3.bf16.msra.mxu1 %v1060_v57  ;;  %v1070_v18 = vpack.c.bf16 %v469_v15, %v468_v14  ;;  %v453_v20 = vld [vmem:[#allocation7 + $0x58] sm:$0xff]  ;;  %v471_v22 = vld [vmem:[#allocation7 + $0xe8] sm:$0xff]  ;;  %v454_v26 = vld [vmem:[#allocation7 + $0x60] sm:$0xff] }
  0xb2   : > { %1037 = vmatpush1.bf16.msra.mxu0 %v1036_v46  ;;  %1063 = vmatprep.subr.bf16.mxu1 %v1062_v60  ;;  %v1072_v23 = vpack.c.bf16 %v453_v20, %v452_v19  ;;  %v336_v24 = vld [vmem:[%s286_s18] sm:$0xff]  ;;  %v1074_v25 = vpack.c.bf16 %v471_v22, %v470_v21  ;;  %v455_v27 = vld [vmem:[#allocation7 + $0x68] sm:$0xff]  ;;  %v545_v37 = vld [vmem:[#allocation8] sm:$0xff] }
  0xb3   : > { %1039 = vmatprep.subr.bf16.mxu0 %v1038_v51  ;;  %v1076_v28 = vpack.c.bf16 %v455_v27, %v454_v26  ;;  %v472_v29 = vld [vmem:[#allocation7 + $0xf0] sm:$0xff]  ;;  %v473_v30 = vld [vmem:[#allocation7 + $0xf8] sm:$0xff]  ;;  %v546_v35 = vld [vmem:[#allocation8 + $0x8] sm:$0xff] }
  0xb4   : > { %v1078_v31 = vpack.c.bf16 %v473_v30, %v472_v29  ;;  %v456_v32 = vld [vmem:[#allocation7 + $0x70] sm:$0xff]  ;;  %v457_v33 = vld [vmem:[#allocation7 + $0x78] sm:$0xff]  ;;  %v550_v40 = vld [vmem:[#allocation8 + $0x28] sm:$0xff] }
  0xb5   : > { %1065 = vmatpush3.bf16.msra.mxu1 %v1064_v6  ;;  %v1080_v34 = vpack.c.bf16 %v457_v33, %v456_v32  ;;  %v548_v36 = vld [vmem:[#allocation8 + $0x18] sm:$0xff]  ;;  %v547_v39 = vld [vmem:[#allocation8 + $0x10] sm:$0xff]  ;;  %v549_v44 = vld [vmem:[#allocation8 + $0x20] sm:$0xff] }
  0xb6   : > { %1041 = vmatpush1.bf16.msra.mxu0 %v1040_v58  ;;  %1067 = vmatprep.subr.bf16.mxu1 %v1066_v9  ;;  %v1082_v38 = vpack.c.bf16 %v548_v36, %v546_v35  ;;  %v552_v41 = vld [vmem:[#allocation8 + $0x38] sm:$0xff]  ;;  %v1084_v42 = vpack.c.bf16 %v547_v39, %v545_v37  ;;  %v554_v45 = vld [vmem:[#allocation8 + $0x48] sm:$0xff]  ;;  %v553_v49 = vld [vmem:[#allocation8 + $0x40] sm:$0xff] }
  0xb7   : > { %1043 = vmatprep.subr.bf16.mxu0 %v1042_v63  ;;  %v1086_v43 = vpack.c.bf16 %v552_v41, %v550_v40  ;;  %v556_v46 = vld [vmem:[#allocation8 + $0x58] sm:$0xff]  ;;  %v555_v50 = vld [vmem:[#allocation8 + $0x50] sm:$0xff]  ;;  %v558_v51 = vld [vmem:[#allocation8 + $0x68] sm:$0xff] }
  0xb8   : > { %v1090_v48 = vpack.c.bf16 %v556_v46, %v554_v45  ;;  %v560_v52 = vld [vmem:[#allocation8 + $0x78] sm:$0xff]  ;;  %v1092_v53 = vpack.c.bf16 %v555_v50, %v553_v49  ;;  %v557_v55 = vld [vmem:[#allocation8 + $0x60] sm:$0xff]  ;;  %v559_v56 = vld [vmem:[#allocation8 + $0x70] sm:$0xff] }
  0xb9   : > { %1069 = vmatpush3.bf16.msra.mxu1 %v1068_v16  ;;  %v1094_v54 = vpack.c.bf16 %v560_v52, %v558_v51  ;;  %v562_v57 = vld [vmem:[#allocation8 + $0x88] sm:$0xff]  ;;  %v564_v58 = vld [vmem:[#allocation8 + $0x98] sm:$0xff]  ;;  %v1096_v59 = vpack.c.bf16 %v559_v56, %v557_v55  ;;  %v561_v61 = vld [vmem:[#allocation8 + $0x80] sm:$0xff] }
  0xba   : > { %1045 = vmatpush1.bf16.msra.mxu0 %v1044_v7  ;;  %1071 = vmatprep.subr.bf16.mxu1 %v1070_v18  ;;  %v1098_v60 = vpack.c.bf16 %v564_v58, %v562_v57  ;;  %v563_v62 = vld [vmem:[#allocation8 + $0x90] sm:$0xff]  ;;  %v566_v63 = vld [vmem:[#allocation8 + $0xa8] sm:$0xff]  ;;  %v568_v1 = vld [vmem:[#allocation8 + $0xb8] sm:$0xff] }
  0xbb   : > { %1047 = vmatprep.subr.bf16.mxu0 %v1046_v12  ;;  %v1100_v2 = vpack.c.bf16 %v563_v62, %v561_v61  ;;  %v1102_v3 = vpack.c.bf16 %v568_v1, %v566_v63  ;;  %v565_v4 = vld [vmem:[#allocation8 + $0xa0] sm:$0xff]  ;;  %v567_v5 = vld [vmem:[#allocation8 + $0xb0] sm:$0xff]  ;;  %v570_v6 = vld [vmem:[#allocation8 + $0xc8] sm:$0xff] }
  0xbc   : > { %v572_v7 = vld [vmem:[#allocation8 + $0xd8] sm:$0xff]  ;;  %v1104_v8 = vpack.c.bf16 %v567_v5, %v565_v4  ;;  %v569_v10 = vld [vmem:[#allocation8 + $0xc0] sm:$0xff]  ;;  %v571_v11 = vld [vmem:[#allocation8 + $0xd0] sm:$0xff] }
  0xbd   : > { %1073 = vmatpush3.bf16.msra.mxu1 %v1072_v23  ;;  %v1106_v9 = vpack.c.bf16 %v572_v7, %v570_v6  ;;  %v1108_v12 = vpack.c.bf16 %v571_v11, %v569_v10  ;;  %v576_v18 = vld [vmem:[#allocation8 + $0xf8] sm:$0xff]  ;;  %v573_v20 = vld [vmem:[#allocation8 + $0xe0] sm:$0xff]  ;;  %v575_v21 = vld [vmem:[#allocation8 + $0xf0] sm:$0xff] }
  0xbe   : > { %1049 = vmatpush1.bf16.msra.mxu0 %v1048_v17  ;;  %1075 = vmatprep.subr.bf16.mxu1 %v1074_v25  ;;  %v574_v17 = vld [vmem:[#allocation8 + $0xe8] sm:$0xff]  ;;  %v1112_v22 = vpack.c.bf16 %v575_v21, %v573_v20  ;;  %v666_v23 = vld [vmem:[#allocation10 + $0x80] sm:$0xff]  ;;  %v669_v29 = vld [vmem:[#allocation10 + $0x98] sm:$0xff] }
  0xbf   : > { %1083 = vmatprep.subr.bf16.mxu0 %v1082_v38  ;;  %v1110_v19 = vpack.c.bf16 %v576_v18, %v574_v17  ;;  %v650_v25 = vld [vmem:[#allocation10] sm:$0xff]  ;;  %v651_v27 = vld [vmem:[#allocation10 + $0x8] sm:$0xff]  ;;  %v652_v32 = vld [vmem:[#allocation10 + $0x10] sm:$0xff] }
  0xc0   : > { %v1116_v30 = vpack.c.bf16 %v651_v27, %v650_v25  ;;  %v653_v33 = vld [vmem:[#allocation10 + $0x18] sm:$0xff]  ;;  %v671_v35 = vld [vmem:[#allocation10 + $0xa8] sm:$0xff]  ;;  %v654_v38 = vld [vmem:[#allocation10 + $0x20] sm:$0xff] }
  0xc1   : > { %434 = vmatmul.mubr.f32.vlgmr.msra.gmra.mrb[0].mxu0 %v336_v24  ;;  %1077 = vmatpush3.bf16.msra.mxu1 %v1076_v28  ;;  %v667_v24 = vld [vmem:[#allocation10 + $0x88] sm:$0xff]  ;;  %v668_v28 = vld [vmem:[#allocation10 + $0x90] sm:$0xff]  ;;  %v1120_v36 = vpack.c.bf16 %v653_v33, %v652_v32  ;;  %v673_v41 = vld [vmem:[#allocation10 + $0xb8] sm:$0xff] }
  0xc2   : > { %641 = vmatprep.mubr.f32.mxu0 %v1502_v0  ;;  %1079 = vmatprep.subr.bf16.mxu1 %v1078_v31  ;;  %v551_v0 = vld [vmem:[#allocation8 + $0x30] sm:$0xff]  ;;  %v1114_v26 = vpack.c.bf16 %v667_v24, %v666_v23  ;;  %v1118_v31 = vpack.c.bf16 %v669_v29, %v668_v28  ;;  %v655_v39 = vld [vmem:[#allocation10 + $0x28] sm:$0xff]  ;;  %v674_v45 = vld [vmem:[#allocation10 + $0xc0] sm:$0xff] }
  0xc3   : > { %1085 = vmatpush1.bf16.msra.mxu0 %v1084_v42  ;;  %v1088_v47 = vpack.c.bf16 %v551_v0, %v549_v44  ;;  %v672_v40 = vld [vmem:[#allocation10 + $0xb0] sm:$0xff]  ;;  %v1124_v42 = vpack.c.bf16 %v655_v39, %v654_v38  ;;  %v657_v0 = vld [vmem:[#allocation10 + $0x38] sm:$0xff]  ;;  %v675_v46 = vld [vmem:[#allocation10 + $0xc8] sm:$0xff] }
  0xc4   : > { %1087 = vmatprep.subr.bf16.mxu0 %v1086_v43  ;;  %v1126_v43 = vpack.c.bf16 %v673_v41, %v672_v40  ;;  %v656_v44 = vld [vmem:[#allocation10 + $0x30] sm:$0xff]  ;;  %v658_v49 = vld [vmem:[#allocation10 + $0x40] sm:$0xff]  ;;  %v659_v50 = vld [vmem:[#allocation10 + $0x48] sm:$0xff] }
  0xc5   : > { %1081 = vmatpush3.bf16.msra.mxu1 %v1080_v34  ;;  %v670_v34 = vld [vmem:[#allocation10 + $0xa0] sm:$0xff]  ;;  %v676_v51 = vld [vmem:[#allocation10 + $0xd0] sm:$0xff]  ;;  %v677_v52 = vld [vmem:[#allocation10 + $0xd8] sm:$0xff] }
  0xc6   : > { %1115 = vmatprep.subr.bf16.mxu1 %v1114_v26  ;;  %v1122_v37 = vpack.c.bf16 %v671_v35, %v670_v34  ;;  %v660_v55 = vld [vmem:[#allocation10 + $0x50] sm:$0xff]  ;;  %v661_v56 = vld [vmem:[#allocation10 + $0x58] sm:$0xff]  ;;  %v678_v57 = vld [vmem:[#allocation10 + $0xe0] sm:$0xff] }
  0xc7   : > { %1089 = vmatpush1.bf16.msra.mxu0 %v1088_v47  ;;  %v1128_v47 = vpack.c.bf16 %v657_v0, %v656_v44  ;;  %v679_v58 = vld [vmem:[#allocation10 + $0xe8] sm:$0xff]  ;;  %v662_v61 = vld [vmem:[#allocation10 + $0x60] sm:$0xff]  ;;  %v680_v4 = vld [vmem:[#allocation10 + $0xf0] sm:$0xff] }
  0xc8   : > { %1091 = vmatprep.subr.bf16.mxu0 %v1090_v48  ;;  %v1130_v48 = vpack.c.bf16 %v675_v46, %v674_v45  ;;  %v663_v62 = vld [vmem:[#allocation10 + $0x68] sm:$0xff]  ;;  %v681_v5 = vld [vmem:[#allocation10 + $0xf8] sm:$0xff]  ;;  %v664_v7 = vld [vmem:[#allocation10 + $0x70] sm:$0xff] }
  0xc9   : > { %v1140_v63 = vpack.c.bf16 %v663_v62, %v662_v61  ;;  %v1142_v6 = vpack.c.bf16 %v681_v5, %v680_v4 }
  0xcb   : > { %1093 = vmatpush1.bf16.msra.mxu0 %v1092_v53  ;;  %v1132_v53 = vpack.c.bf16 %v659_v50, %v658_v49 }
  0xcc   : > { %1095 = vmatprep.subr.bf16.mxu0 %v1094_v54  ;;  %v1134_v54 = vpack.c.bf16 %v677_v52, %v676_v51 }
  0xcf   : > { %1097 = vmatpush1.bf16.msra.mxu0 %v1096_v59  ;;  %v1136_v59 = vpack.c.bf16 %v661_v56, %v660_v55 }
  0xd0   : > { %1099 = vmatprep.subr.bf16.mxu0 %v1098_v60  ;;  %v1138_v60 = vpack.c.bf16 %v679_v58, %v678_v57 }
  0xd3   : > { %1101 = vmatpush1.bf16.msra.mxu0 %v1100_v2 }
  0xd4   : > { %1103 = vmatprep.subr.bf16.mxu0 %v1102_v3 }
  0xd7   : > { %1105 = vmatpush1.bf16.msra.mxu0 %v1104_v8  ;;  %v665_v8 = vld [vmem:[#allocation10 + $0x78] sm:$0xff] }
  0xd8   : > { %1107 = vmatprep.subr.bf16.mxu0 %v1106_v9  ;;  %v1144_v9 = vpack.c.bf16 %v665_v8, %v664_v7 }
  0xdb   : > { %1109 = vmatpush1.bf16.msra.mxu0 %v1108_v12 }
  0xdc   : > { %1111 = vmatprep.subr.bf16.mxu0 %v1110_v19 }
  0xdf   : > { %1113 = vmatpush1.bf16.msra.mxu0 %v1112_v22 }
 0x194   : > { %v435_v13 = vpop.f32.mrb[0].mxu0 }
 0x195   : > { %v437_v14 = vpop.f32.mrb[1].mxu0  ;;  %v440_v16 = vmax.f32 %v435_v13, 0.0 }
 0x196   : > { %v441_v15 = vmax.f32 %v437_v14, 0.0 }
 0x198   : > { %538 = vmatprep.mubr.f32.mxu1 %v441_v15 }
 0x199   : > { %539 = vmatmul.mubr.f32.vlgmr.msra.gmra.mrb[0].mxu1 %v440_v16 }
 0x19a   : > { %1117 = vmatpush3.bf16.msra.mxu1 %v1116_v30 }
 0x19b   : > { %1119 = vmatprep.subr.bf16.mxu1 %v1118_v31 }
 0x19e   : > { %1121 = vmatpush3.bf16.msra.mxu1 %v1120_v36 }
 0x19f   : > { %1123 = vmatprep.subr.bf16.mxu1 %v1122_v37 }
 0x1a2   : > { %1125 = vmatpush3.bf16.msra.mxu1 %v1124_v42 }
 0x1a3   : > { %1127 = vmatprep.subr.bf16.mxu1 %v1126_v43 }
 0x1a6   : > { %1129 = vmatpush3.bf16.msra.mxu1 %v1128_v47 }
 0x1a7   : > { %1131 = vmatprep.subr.bf16.mxu1 %v1130_v48 }
 0x1aa   : > { %1133 = vmatpush3.bf16.msra.mxu1 %v1132_v53 }
 0x1ab   : > { %1135 = vmatprep.subr.bf16.mxu1 %v1134_v54 }
 0x1ae   : > { %1137 = vmatpush3.bf16.msra.mxu1 %v1136_v59 }
 0x1af   : > { %1139 = vmatprep.subr.bf16.mxu1 %v1138_v60 }
 0x1b2   : > { %1141 = vmatpush3.bf16.msra.mxu1 %v1140_v63 }
 0x1b3   : > { %1143 = vmatprep.subr.bf16.mxu1 %v1142_v6 }
 0x1b6   : > { %1145 = vmatpush3.bf16.msra.mxu1 %v1144_v9 }
 0x26c   : > { %v980_v1 = vpop.f32.mrb[0].mxu1 }
 0x26d   : > { %v981_v2 = vpop.f32.mrb[1].mxu1 }
 0x26e   : > { %v982_v3 = vadd.f32 %v981_v2, %v980_v1 }
 0x270   : > { %544 = vst [vmem:[%s328_s28] sm:$0xff] %v982_v3  ;;  %642 = vmatmul.mubr.f32.vlgmr.msra.gmra.mrb[2].mxu0 %v982_v3 }
 0x343   : > { %v643_v10 = vpop.f32.mrb[2].mxu0 }
 0x344   : > { %v645_v11 = vpop.f32.mrb[3].mxu0  ;;  %v648_v13 = vmax.f32 %v643_v10, 0.0 }
 0x345   : > { %v649_v12 = vmax.f32 %v645_v11, 0.0 }
 0x347   : > { %746 = vmatprep.mubr.f32.mxu1 %v649_v12 }
 0x348   : > { %747 = vmatmul.mubr.f32.vlgmr.msra.gmra.mrb[2].mxu1 %v648_v13 }
 0x349   : > { %1398 = shalt.err (!%p1395_p0)
}
 0x34a   : > { %s1399_s8 = scalar_lea.hbm %s1786_s15, 128  ;;  %s1403_s13 = scalar_lea.hbm %s1861_s5, 256 }
 0x34b   : > { %p1400_p2 = scmp.ne.s32.totalorder %s1786_s15, %s1399_s8  ;;  %p1404_p10 = scmp.lt.u32.totalorder %s1786_s15, %s1861_s5 }
 0x34c   : > { %p1405_p11 = scmp.lt.u32.totalorder %s1403_s13, %s1399_s8  ;;  %p1407_p6 = scmp.lt.u32.totalorder %s1399_s8, %s1786_s15 }
 0x34d   : > { %p1401_p8 = pnand %p1400_p2, %p1880_p5 }
 0x34e   : > { %p1406_p1 = por %p1405_p11, %p1404_p10 }
 0x34f   : > { %p1402_p4 = pneg %p1401_p8 }
 0x350   : > { %p1408_p7 = por %p1407_p6, %p1406_p1 }
 0x352   : > { %p1409_p9 = pnand %p1408_p7, %p1402_p4 }
 0x354   : > { %1412 = shalt.err (!%p1409_p9)
}
 0x355   : > { %1164 = dma.vmem_to_hbm [thread:$0]  (%p1880_p5), %s773_s12, 128, %s1786_s15, %s754_s10  }
 0x356   : > { %s335_s20 = scalar_lea.vmem [#allocation12], %s1759_s29  ;;  %s1812_s8 = scalar_lea.hbm %s1862_s6, %s944_s19 }
 0x357   : > { %s785_s9 = sshll.u32 %s335_s20, 4  ;;  %s759_s28 = scalar_lea.sflag [#allocation13], %s1756_s14  ;;  %s1814_s9 = int_to_ptr.vmem [resolvable:$true] %s785_s9 }
 0x358   : > { %s1413_s13 = scalar_lea.vmem %s1814_s9, 128  ;;  %s1504_s29 = smov [#allocation12]  }
 0x359   : > { %p1414_p12 = scmp.ne.s32.totalorder %s1814_s9, %s1413_s13  ;;  %s1417_s12 = sshll.u32 %s1504_s29, 4  ;;  %s1418_s12 = int_to_ptr.vmem [resolvable:$false] %s1417_s12 }
 0x35a   : > { %s1419_s27 = scalar_lea.vmem %s1418_s12, 256  ;;  %p1420_p0 = scmp.lt.s32.totalorder %s1814_s9, %s1418_s12 }
 0x35b   : > { %p1415_p3 = pnand %p1414_p12, %p1880_p5  ;;  %p1421_p2 = scmp.lt.s32.totalorder %s1419_s27, %s1413_s13 }
 0x35d   : > { %p1416_p13 = pneg %p1415_p3  ;;  %p1422_p8 = por %p1421_p2, %p1420_p0 }
 0x35f   : > { %p1423_p4 = pnand %p1422_p8, %p1416_p13 }
 0x41b   : > { %v1015_v14 = vpop.f32.mrb[2].mxu1 }
 0x41c   : > { %v1016_v15 = vpop.f32.mrb[3].mxu1 }
 0x41d   : > { %v1017_v16 = vadd.f32 %v1016_v15, %v1015_v14 }
 0x41f   : > { %752 = vst [vmem:[%s335_s20] sm:$0xff] %v1017_v16 }
 0x420   : > { %1426 = shalt.err (!%p1423_p4)
}
 0x421   : > { %s1427_s14 = scalar_lea.hbm %s1812_s8, 128  ;;  %s1431_s10 = scalar_lea.hbm %s1862_s6, 256 }
 0x422   : > { %p1428_p10 = scmp.ne.s32.totalorder %s1812_s8, %s1427_s14  ;;  %p1432_p6 = scmp.lt.u32.totalorder %s1812_s8, %s1862_s6 }
 0x423   : > { %p1433_p7 = scmp.lt.u32.totalorder %s1431_s10, %s1427_s14  ;;  %p1435_p12 = scmp.lt.u32.totalorder %s1427_s14, %s1812_s8 }
 0x424   : > { %p1429_p11 = pnand %p1428_p10, %p1880_p5 }
 0x425   : > { %p1434_p9 = por %p1433_p7, %p1432_p6 }
 0x426   : > { %p1430_p1 = pneg %p1429_p11 }
 0x427   : > { %p1436_p3 = por %p1435_p12, %p1434_p9 }
 0x429   : > { %p1437_p13 = pnand %p1436_p3, %p1430_p1 }
 0x42b   : > { %1440 = shalt.err (!%p1437_p13)
}
 0x42c   : > { %1165 = dma.vmem_to_hbm [thread:$0]  (%p1880_p5), %s1814_s9, 128, %s1812_s8, %s759_s28  }
 0x42d PF: > { %s797_s20 = sand.u32 1, %s1479_s21   ;;  %p1881_p0 = scmp.ne.s32.totalorder %s1873_s25, 0 }
 0x42e   : > { %p1882_p2 = scmp.ge.s32.totalorder %s1491_s24, 2  ;;  %s798_s16 = scalar_lea.sflag [#allocation4], %s797_s20 }
 0x430   : > { %p1186_p8 = pnand %p1882_p2, %p1881_p0 }
 0x432   : > { %1470 = dma.done.wait (!%p1186_p8), %s798_s16, 128  }
 0x433   : > { %1472 = vsyncadd (!%p1186_p8), %s798_s16, 4294967168  ;;  %s807_s18 = scalar_lea.sflag [#allocation13], %s797_s20 }
 0x434   : > { %1474 = dma.done.wait (!%p1186_p8), %s807_s18, 128  }
 0x435   : > { %1476 = vsyncadd (!%p1186_p8), %s807_s18, 4294967168  ;;  %p25_p5 = scmp.ge.s32.totalorder %s1680_s7, 4   ;;  %s1883_s21 = smov %s1483_s22 }
 0x436   : > { %s1884_s22 = smov %s1487_s23  ;;  %s1885_s23 = smov %s1691_s26 }
 0x437   : > { %s1886_s24 = smov %s1680_s7  ;;  %27 = sbr.rel (!%p25_p5) target bundleno = 9 (0x9), region = 118 }
 0x43e   :  { %812 = vsyncpa [#allocation3], 1 }
 0x43f   :  { %814 = vsyncpa [#allocation3 + $0x1], 1 }
 0x440   :  { %815 = vsyncpa [#allocation6], 1 }
 0x441   :  { %816 = vsyncpa [#allocation9], 1 }
 0x442   :  { %817 = vsyncpa [#allocation4], 1 }
 0x443   :  { %819 = vsyncpa [#allocation4 + $0x1], 1 }
 0x444   :  { %820 = vsyncpa [#allocation13], 1 }
 0x445   :  { %822 = vsyncpa [#allocation13 + $0x1], 1 }

</bundles_post_ra>
